<compile_context>
chip_gen: v7x
topology: tpu7x:2x2x1
jax: 0.10.0
libtpu: 0.0.40
codegen_flags: <defaults>
</compile_context>

<pallas_src>
import math

import jax
import jax.numpy as jnp
from jax.experimental import pallas as pl
from jax.experimental.pallas import tpu as pltpu


LANE = 128
SUBLANE = 8


def _round_up(v, m):
    return (v + m - 1) // m * m


# --------------------------------------------------------------------------- #
# Pallas kernel: conv-as-matmul + BN-folded MLP + log_softmax
# --------------------------------------------------------------------------- #
def _make_kernel(num_hidden_blocks):
    """Ref order:
      x, conv_mat, conv_b,
      [per hidden block: lin_w_T(folded), lin_b(folded)] * num_hidden_blocks,
      lin_last_T, lin_last_b,
      out_ref
    """

    def kernel(x_ref, conv_mat_ref, conv_b_ref, *rest):
        out_ref = rest[-1]
        params = rest[:-1]

        # ---- depthwise Conv1d (groups=nF, kernel=depth, L=depth -> Lout=1) --
        # w_new is folded into conv_mat in the wrapper, so the whole conv is a
        # single lane-dense MXU matmul (x already in matmul dtype).
        h = (
            jnp.dot(x_ref[...], conv_mat_ref[...],
                    preferred_element_type=jnp.float32)
            + conv_b_ref[...]
        )                                                        # (TILE_N, nF_p) f32
        h = jnp.maximum(h, 0.0)

        # ---- MLP: (Linear with BN folded in) -> ReLU ------------------------
        idx = 0
        for _ in range(num_hidden_blocks):
            w_t, b = params[idx:idx + 2]
            idx += 2
            h = (
                jnp.dot(h.astype(w_t.dtype), w_t[...],
                        preferred_element_type=jnp.float32)
                + b[...]
            )
            h = jnp.maximum(h, 0.0)
            # dropout: identity in eval mode

        w_t, b = params[idx:idx + 2]
        logits = (
            jnp.dot(h.astype(w_t.dtype), w_t[...],
                    preferred_element_type=jnp.float32)
            + b[...]
        )                                                        # (TILE_N, out_p)

        # ---- log_softmax over last dim (padded columns carry -1e30 bias) ----
        m = jnp.max(logits, axis=-1, keepdims=True)
        z = logits - m
        lse = jnp.log(jnp.sum(jnp.exp(z), axis=-1, keepdims=True))
        out_ref[...] = (z - lse).astype(out_ref.dtype)

    return kernel


# --------------------------------------------------------------------------- #
# Wrapper: LSTM weight update (param-only, hoisted), BN folding, padding, grid
# --------------------------------------------------------------------------- #
def lstm_conv_mlp_forward(x, params, *, matmul_dtype=jnp.bfloat16, tile_n=1024):
    N, nF, depth = x.shape
    H = nF * depth
    eps = 1e-5
    NEG = jnp.float32(-1e30)
    mm_itemsize = jnp.dtype(matmul_dtype).itemsize

    # ---- 1-step LSTM over the flattened conv weight (batch-independent) ----
    # h0 = c0 = 0 => forget gate is dead; i, g, o gates done in one matmul.
    w_flat = params["conv_w"].reshape(1, H).astype(jnp.float32)
    w_ih = params["lstm_w_ih"]
    b_sum = params["lstm_b_ih"] + params["lstm_b_hh"]
    w_igo = jnp.concatenate(
        [w_ih[0 * H:1 * H], w_ih[2 * H:3 * H], w_ih[3 * H:4 * H]], axis=0)  # (3H, H)
    b_igo = jnp.concatenate(
        [b_sum[0 * H:1 * H], b_sum[2 * H:3 * H], b_sum[3 * H:4 * H]])       # (3H,)
    z = w_flat @ w_igo.T + b_igo                                            # (1, 3H)
    i_g = jax.nn.sigmoid(z[:, 0 * H:1 * H])
    g_g = jnp.tanh(z[:, 1 * H:2 * H])
    o_g = jax.nn.sigmoid(z[:, 2 * H:3 * H])
    w_new = o_g * jnp.tanh(i_g * g_g)                                       # (1, H)

    # ---- padded sizes (lane-dense) ------------------------------------------
    H_p = _round_up(H, LANE)
    nF_p = _round_up(nF, LANE)
    out_c = params["lin_last_w"].shape[0]
    out_p = _round_up(out_c, LANE)

    # Row alignment follows the packed sublane size of the matmul dtype
    # (8 for f32, 16 for bf16), so batch tiles are always layout-legal.
    row_align = max(SUBLANE, SUBLANE * 4 // mm_itemsize)
    n_rows = _round_up(max(N, 1), row_align)
    tile_n = max(_round_up(tile_n, row_align), row_align)
    if n_rows >= 2 * tile_n:
        tile = tile_n                       # large batch: stream tiles
    elif n_rows >= 512:
        # moderate batch: 2 grid steps so v7x's second TensorCore gets work
        tile = _round_up((n_rows + 1) // 2, row_align)
    else:
        tile = n_rows                       # tiny batch: single step
    N_p = _round_up(n_rows, tile)

    # ---- batch input: cast to matmul dtype in the wrapper (halves x DMA) ----
    x_flat = x.reshape(N, H)
    if N == N_p and H == H_p:
        x_p = x_flat.astype(matmul_dtype)   # no extra pad copy of x
    else:
        x_p = jnp.zeros((N_p, H_p), matmul_dtype).at[:N, :H].set(
            x_flat.astype(matmul_dtype))

    # ---- conv as matmul: fold w_new into the per-channel selection matrix ---
    # conv_mat[f*depth + d, f] = w_new[0, f*depth + d]; zero elsewhere.
    sel = jnp.kron(jnp.eye(nF, dtype=jnp.float32), jnp.ones((depth, 1), jnp.float32))
    conv_mat = sel * w_new.reshape(H, 1)                          # (H, nF) f32
    conv_mat_p = (
        jnp.zeros((H_p, nF_p), jnp.float32).at[:H, :nF].set(conv_mat)
    ).astype(matmul_dtype)
    conv_b_p = jnp.zeros((1, nF_p), jnp.float32).at[:, :nF].set(
        params["conv_b"].reshape(1, nF))

    inputs = [x_p, conv_mat_p, conv_b_p]

    # ---- hidden blocks: fold BN into the Linear, zero-pad to lane multiples --
    in_dim, in_dim_p = nF, nF_p
    for (lw, lb, bn_g, bn_b, bn_m, bn_v) in params["hidden"]:
        out_dim = lw.shape[0]
        out_dim_p = _round_up(out_dim, LANE)
        scale = bn_g / jnp.sqrt(bn_v + eps)
        shift = bn_b - bn_m * scale
        w_fold = lw.T * scale[None, :]                            # (in_dim, out_dim)
        b_fold = lb * scale + shift
        w_p = jnp.zeros((in_dim_p, out_dim_p), jnp.float32).at[:in_dim, :out_dim].set(w_fold)
        b_p = jnp.zeros((1, out_dim_p), jnp.float32).at[:, :out_dim].set(
            b_fold.reshape(1, -1))
        inputs += [w_p.astype(matmul_dtype), b_p]
        in_dim, in_dim_p = out_dim, out_dim_p

    # ---- final Linear: pad output columns; padded bias = -1e30 so log_softmax
    #      over the real columns is unaffected -------------------------------
    wl = params["lin_last_w"].T                                   # (in_dim, out_c)
    wl_p = jnp.zeros((in_dim_p, out_p), jnp.float32).at[:in_dim, :out_c].set(wl)
    bl_p = jnp.full((1, out_p), NEG, jnp.float32).at[:, :out_c].set(
        params["lin_last_b"].reshape(1, -1))
    inputs += [wl_p.astype(matmul_dtype), bl_p]

    # ---- specs: x / out tiled over the batch; weights VMEM-resident ---------
    in_specs = [pl.BlockSpec((tile, H_p), lambda i: (i, 0))]
    for a in inputs[1:]:
        in_specs.append(pl.BlockSpec(a.shape, lambda i: (0, 0)))
    out_specs = pl.BlockSpec((tile, out_p), lambda i: (i, 0))

    # ---- VMEM budget: double-buffered I/O + resident weights + slack --------
    weight_bytes = sum(int(a.size) * a.dtype.itemsize for a in inputs[1:])
    io_bytes = tile * H_p * mm_itemsize + tile * out_p * 4
    vmem_need = 2 * io_bytes + 2 * weight_bytes + (2 << 20)
    vmem_limit = int(min(max(vmem_need, 32 << 20), 64 << 20))

    # ---- advisory cost estimate ----------------------------------------------
    dims = [nF_p] + [_round_up(h[0].shape[0], LANE) for h in params["hidden"]] + [out_p]
    flops = 2 * N_p * H_p * nF_p
    for a_d, b_d in zip(dims[:-1], dims[1:]):
        flops += 2 * N_p * a_d * b_d
    transcendentals = N_p * out_p                                 # exp in log_softmax
    bytes_accessed = (sum(int(a.size) * a.dtype.itemsize for a in inputs)
                      + N_p * out_p * 4)
    cost = pl.CostEstimate(flops=int(flops), transcendentals=int(transcendentals),
                           bytes_accessed=int(bytes_accessed))

    kernel = _make_kernel(len(params["hidden"]))

    out_padded = pl.pallas_call(
        kernel,
        out_shape=jax.ShapeDtypeStruct((N_p, out_p), jnp.float32),
        grid=(N_p // tile,),
        in_specs=in_specs,
        out_specs=out_specs,
        compiler_params=pltpu.CompilerParams(
            dimension_semantics=("parallel",),    # use both TCs on v7x (>=2 steps)
            vmem_limit_bytes=vmem_limit),
        cost_estimate=cost,
    )(*inputs)

    return out_padded[:N, :out_c]


# --------------------------------------------------------------------------- #
# Deterministic parameter init (matches PyTorch module's __init__ shapes)
# --------------------------------------------------------------------------- #
def init_params(key, depth, nF, num_layers, hidden_channels, out_channels):
    H = depth * nF
    keys = iter(jax.random.split(key, 4 + 2 * num_layers + 4))

    def unif(k, shape, bound):
        return jax.random.uniform(k, shape, jnp.float32, -bound, bound)

    p = {}
    # Conv1d(nF, nF, depth, groups=nF): weight (nF, 1, depth), bias (nF,)
    b_conv = 1.0 / math.sqrt(depth)
    p["conv_w"] = unif(next(keys), (nF, 1, depth), b_conv)
    p["conv_b"] = unif(next(keys), (nF,), b_conv)

    # LSTM(depth*nF, depth*nF, num_layers=1)
    b_lstm = 1.0 / math.sqrt(H)
    p["lstm_w_ih"] = unif(next(keys), (4 * H, H), b_lstm)
    p["lstm_b_ih"] = unif(next(keys), (4 * H,), b_lstm)
    p["lstm_b_hh"] = unif(next(keys), (4 * H,), b_lstm)
    # (weight_hh multiplies h0 == 0, so it does not affect the forward pass)

    # Linear + BatchNorm1d blocks: Linear(nF, hid), then (num_layers-2) x Linear(hid, hid)
    hidden = []
    in_dim = nF
    for _ in range(num_layers - 1):
        b_lin = 1.0 / math.sqrt(in_dim)
        lw = unif(next(keys), (hidden_channels, in_dim), b_lin)
        lb = unif(next(keys), (hidden_channels,), b_lin)
        bn_g = jnp.ones((hidden_channels,), jnp.float32)
        bn_b = jnp.zeros((hidden_channels,), jnp.float32)
        bn_m = jnp.zeros((hidden_channels,), jnp.float32)
        bn_v = jnp.ones((hidden_channels,), jnp.float32)
        hidden.append((lw, lb, bn_g, bn_b, bn_m, bn_v))
        in_dim = hidden_channels
    p["hidden"] = hidden

    # Final Linear(hidden, out_channels)
    b_lin = 1.0 / math.sqrt(hidden_channels)
    p["lin_last_w"] = unif(next(keys), (out_channels, hidden_channels), b_lin)
    p["lin_last_b"] = unif(next(keys), (out_channels,), b_lin)
    return p


# --------------------------------------------------------------------------- #
# Pure-JAX reference (for correctness check) — full LSTM gates, unfolded BN
# --------------------------------------------------------------------------- #
def reference_forward(x, params):
    N, nF, depth = x.shape
    H = nF * depth
    eps = 1e-5

    w = params["conv_w"].reshape(1, H)
    gates = w @ params["lstm_w_ih"].T + params["lstm_b_ih"] + params["lstm_b_hh"]
    i = jax.nn.sigmoid(gates[:, 0 * H:1 * H])
    f = jax.nn.sigmoid(gates[:, 1 * H:2 * H])
    g = jnp.tanh(gates[:, 2 * H:3 * H])
    o = jax.nn.sigmoid(gates[:, 3 * H:4 * H])
    w_new = (o * jnp.tanh(f * 0.0 + i * g)).reshape(nF, depth)

    conv = jnp.sum(x * w_new[None, :, :], axis=-1) + params["conv_b"]
    h = jax.nn.relu(conv)
    for (lw, lb, bn_g, bn_b, bn_m, bn_v) in params["hidden"]:
        h = h @ lw.T + lb
        h = (h - bn_m) / jnp.sqrt(bn_v + eps) * bn_g + bn_b
        h = jax.nn.relu(h)
    logits = h @ params["lin_last_w"].T + params["lin_last_b"]
    return jax.nn.log_softmax(logits, axis=-1)


# --------------------------------------------------------------------------- #
if __name__ == "__main__":
    # Module hyper-params (L must equal `depth` for the forward to be consistent)
    depth, nF = 16, 8
    num_layers, hidden_channels, out_channels = 3, 32, 8
    N = 8  # batch

    key = jax.random.PRNGKey(0)
    kx, kp = jax.random.split(key)
    x = jax.random.normal(kx, (N, nF, depth), jnp.float32)  # NCL (batch, nF, depth)
    params = init_params(kp, depth, nF, num_layers, hidden_channels, out_channels)

    ref = reference_forward(x, params)

    # Default (performance) path: bf16 matmul operands, f32 accumulation.
    out_bf16 = lstm_conv_mlp_forward(x, params)            # matmul_dtype=bf16
    out_bf16 = jax.block_until_ready(out_bf16)
    assert out_bf16.shape == (N, out_channels)
    assert jnp.allclose(out_bf16, ref, atol=1e-1, rtol=1e-1), \
        float(jnp.max(jnp.abs(out_bf16 - ref)))

    # f32 matmul path: tight numerical check against the pure-JAX reference.
    out_f32 = lstm_conv_mlp_forward(x, params, matmul_dtype=jnp.float32)
    out_f32 = jax.block_until_ready(out_f32)
    assert out_f32.shape == (N, out_channels)
    assert jnp.allclose(out_f32, ref, atol=1e-3, rtol=1e-3), \
        float(jnp.max(jnp.abs(out_f32 - ref)))

    print("KERNEL_OK")
</pallas_src>

<mosaic_0001>
module attributes {stable_mosaic.version = 11 : i64} {
  func.func @kernel(%arg0: i32, %arg1: memref<16x128xbf16, #tpu.memory_space<vmem>>, %arg2: memref<128x128xbf16, #tpu.memory_space<vmem>>, %arg3: memref<1x128xf32, #tpu.memory_space<vmem>>, %arg4: memref<128x128xbf16, #tpu.memory_space<vmem>>, %arg5: memref<1x128xf32, #tpu.memory_space<vmem>>, %arg6: memref<128x128xbf16, #tpu.memory_space<vmem>>, %arg7: memref<1x128xf32, #tpu.memory_space<vmem>>, %arg8: memref<128x128xbf16, #tpu.memory_space<vmem>>, %arg9: memref<1x128xf32, #tpu.memory_space<vmem>>, %arg10: memref<16x128xf32, #tpu.memory_space<vmem>>) attributes {dimension_semantics = [#tpu.dimension_semantics<parallel>], iteration_bounds = array<i64: 1>, scalar_prefetch = 0 : i64, scratch_operands = 0 : i64, tpu.core_type = #tpu.core_type<tc>, window_params = [{transform_indices = @transform_0, window_bounds = array<i64: 16, 128>}, {pipeline_mode = #tpu.pipeline_mode<synchronous>, transform_indices = @transform_1, window_bounds = array<i64: 128, 128>}, {pipeline_mode = #tpu.pipeline_mode<synchronous>, transform_indices = @transform_2, window_bounds = array<i64: 1, 128>}, {pipeline_mode = #tpu.pipeline_mode<synchronous>, transform_indices = @transform_3, window_bounds = array<i64: 128, 128>}, {pipeline_mode = #tpu.pipeline_mode<synchronous>, transform_indices = @transform_4, window_bounds = array<i64: 1, 128>}, {pipeline_mode = #tpu.pipeline_mode<synchronous>, transform_indices = @transform_5, window_bounds = array<i64: 128, 128>}, {pipeline_mode = #tpu.pipeline_mode<synchronous>, transform_indices = @transform_6, window_bounds = array<i64: 1, 128>}, {pipeline_mode = #tpu.pipeline_mode<synchronous>, transform_indices = @transform_7, window_bounds = array<i64: 128, 128>}, {pipeline_mode = #tpu.pipeline_mode<synchronous>, transform_indices = @transform_8, window_bounds = array<i64: 1, 128>}, {transform_indices = @transform_9, window_bounds = array<i64: 16, 128>}]} {
    %c0 = arith.constant 0 : index
    %c0_0 = arith.constant 0 : index
    %0 = vector.load %arg1[%c0, %c0_0] : memref<16x128xbf16, #tpu.memory_space<vmem>>, vector<16x128xbf16>
    %c0_1 = arith.constant 0 : index
    %c0_2 = arith.constant 0 : index
    %1 = vector.load %arg2[%c0_1, %c0_2] : memref<128x128xbf16, #tpu.memory_space<vmem>>, vector<128x128xbf16>
    %cst = arith.constant dense<0.000000e+00> : vector<16x128xf32>
    %2 = tpu.matmul %0, %1, %cst {dimension_numbers = #tpu.dot_dimension_numbers<[1], [0], [0], [1], [0, 0, 1, 1], [], []>} : vector<16x128xbf16>, vector<128x128xbf16>, vector<16x128xf32> -> vector<16x128xf32>
    %c0_3 = arith.constant 0 : index
    %c0_4 = arith.constant 0 : index
    %3 = vector.load %arg3[%c0_3, %c0_4] : memref<1x128xf32, #tpu.memory_space<vmem>>, vector<1x128xf32>
    %4 = vector.broadcast %3 : vector<1x128xf32> to vector<16x128xf32>
    %5 = arith.addf %2, %4 : vector<16x128xf32>
    %cst_5 = arith.constant 0.000000e+00 : f32
    %6 = vector.broadcast %cst_5 : f32 to vector<16x128xf32>
    %7 = arith.maximumf %5, %6 : vector<16x128xf32>
    %8 = arith.truncf %7 : vector<16x128xf32> to vector<16x128xbf16>
    %c0_6 = arith.constant 0 : index
    %c0_7 = arith.constant 0 : index
    %9 = vector.load %arg4[%c0_6, %c0_7] : memref<128x128xbf16, #tpu.memory_space<vmem>>, vector<128x128xbf16>
    %cst_8 = arith.constant dense<0.000000e+00> : vector<16x128xf32>
    %10 = tpu.matmul %8, %9, %cst_8 {dimension_numbers = #tpu.dot_dimension_numbers<[1], [0], [0], [1], [0, 0, 1, 1], [], []>} : vector<16x128xbf16>, vector<128x128xbf16>, vector<16x128xf32> -> vector<16x128xf32>
    %c0_9 = arith.constant 0 : index
    %c0_10 = arith.constant 0 : index
    %11 = vector.load %arg5[%c0_9, %c0_10] : memref<1x128xf32, #tpu.memory_space<vmem>>, vector<1x128xf32>
    %12 = vector.broadcast %11 : vector<1x128xf32> to vector<16x128xf32>
    %13 = arith.addf %10, %12 : vector<16x128xf32>
    %cst_11 = arith.constant 0.000000e+00 : f32
    %14 = vector.broadcast %cst_11 : f32 to vector<16x128xf32>
    %15 = arith.maximumf %13, %14 : vector<16x128xf32>
    %16 = arith.truncf %15 : vector<16x128xf32> to vector<16x128xbf16>
    %c0_12 = arith.constant 0 : index
    %c0_13 = arith.constant 0 : index
    %17 = vector.load %arg6[%c0_12, %c0_13] : memref<128x128xbf16, #tpu.memory_space<vmem>>, vector<128x128xbf16>
    %cst_14 = arith.constant dense<0.000000e+00> : vector<16x128xf32>
    %18 = tpu.matmul %16, %17, %cst_14 {dimension_numbers = #tpu.dot_dimension_numbers<[1], [0], [0], [1], [0, 0, 1, 1], [], []>} : vector<16x128xbf16>, vector<128x128xbf16>, vector<16x128xf32> -> vector<16x128xf32>
    %c0_15 = arith.constant 0 : index
    %c0_16 = arith.constant 0 : index
    %19 = vector.load %arg7[%c0_15, %c0_16] : memref<1x128xf32, #tpu.memory_space<vmem>>, vector<1x128xf32>
    %20 = vector.broadcast %19 : vector<1x128xf32> to vector<16x128xf32>
    %21 = arith.addf %18, %20 : vector<16x128xf32>
    %cst_17 = arith.constant 0.000000e+00 : f32
    %22 = vector.broadcast %cst_17 : f32 to vector<16x128xf32>
    %23 = arith.maximumf %21, %22 : vector<16x128xf32>
    %24 = arith.truncf %23 : vector<16x128xf32> to vector<16x128xbf16>
    %c0_18 = arith.constant 0 : index
    %c0_19 = arith.constant 0 : index
    %25 = vector.load %arg8[%c0_18, %c0_19] : memref<128x128xbf16, #tpu.memory_space<vmem>>, vector<128x128xbf16>
    %cst_20 = arith.constant dense<0.000000e+00> : vector<16x128xf32>
    %26 = tpu.matmul %24, %25, %cst_20 {dimension_numbers = #tpu.dot_dimension_numbers<[1], [0], [0], [1], [0, 0, 1, 1], [], []>} : vector<16x128xbf16>, vector<128x128xbf16>, vector<16x128xf32> -> vector<16x128xf32>
    %c0_21 = arith.constant 0 : index
    %c0_22 = arith.constant 0 : index
    %27 = vector.load %arg9[%c0_21, %c0_22] : memref<1x128xf32, #tpu.memory_space<vmem>>, vector<1x128xf32>
    %28 = vector.broadcast %27 : vector<1x128xf32> to vector<16x128xf32>
    %29 = arith.addf %26, %28 : vector<16x128xf32>
    %cst_23 = arith.constant dense<0xFF800000> : vector<16xf32>
    %30 = vector.multi_reduction <maximumf>, %29, %cst_23 [1] : vector<16x128xf32> to vector<16xf32>
    %31 = vector.shape_cast %30 : vector<16xf32> to vector<16x1xf32>
    %32 = vector.broadcast %31 : vector<16x1xf32> to vector<16x128xf32>
    %33 = arith.subf %29, %32 : vector<16x128xf32>
    %34 = math.exp %33 : vector<16x128xf32>
    %cst_24 = arith.constant dense<0.000000e+00> : vector<16xf32>
    %35 = vector.multi_reduction <add>, %34, %cst_24 [1] : vector<16x128xf32> to vector<16xf32>
    %36 = vector.shape_cast %35 : vector<16xf32> to vector<16x1xf32>
    %37 = math.log %36 : vector<16x1xf32>
    %38 = vector.broadcast %37 : vector<16x1xf32> to vector<16x128xf32>
    %39 = arith.subf %33, %38 : vector<16x128xf32>
    %c0_25 = arith.constant 0 : index
    %c0_26 = arith.constant 0 : index
    %40 = vector.load %arg10[%c0_25, %c0_26] : memref<16x128xf32, #tpu.memory_space<vmem>>, vector<16x128xf32>
    tpu.vector_store %arg10[%c0_25, %c0_26], %39 {strides = array<i32>} : memref<16x128xf32, #tpu.memory_space<vmem>>, vector<16x128xf32>,
    return
  }
  func.func @transform_0(%arg0: i32) -> (i32, i32) {
    %c0_i32 = arith.constant 0 : i32
    %c0_i32_0 = arith.constant 0 : i32
    return %arg0, %c0_i32 : i32, i32
  }
  func.func @transform_1(%arg0: i32) -> (i32, i32) {
    %c0_i32 = arith.constant 0 : i32
    %c0_i32_0 = arith.constant 0 : i32
    %c0_i32_1 = arith.constant 0 : i32
    return %c0_i32, %c0_i32_0 : i32, i32
  }
  func.func @transform_2(%arg0: i32) -> (i32, i32) {
    %c0_i32 = arith.constant 0 : i32
    %c0_i32_0 = arith.constant 0 : i32
    %c0_i32_1 = arith.constant 0 : i32
    return %c0_i32, %c0_i32_0 : i32, i32
  }
  func.func @transform_3(%arg0: i32) -> (i32, i32) {
    %c0_i32 = arith.constant 0 : i32
    %c0_i32_0 = arith.constant 0 : i32
    %c0_i32_1 = arith.constant 0 : i32
    return %c0_i32, %c0_i32_0 : i32, i32
  }
  func.func @transform_4(%arg0: i32) -> (i32, i32) {
    %c0_i32 = arith.constant 0 : i32
    %c0_i32_0 = arith.constant 0 : i32
    %c0_i32_1 = arith.constant 0 : i32
    return %c0_i32, %c0_i32_0 : i32, i32
  }
  func.func @transform_5(%arg0: i32) -> (i32, i32) {
    %c0_i32 = arith.constant 0 : i32
    %c0_i32_0 = arith.constant 0 : i32
    %c0_i32_1 = arith.constant 0 : i32
    return %c0_i32, %c0_i32_0 : i32, i32
  }
  func.func @transform_6(%arg0: i32) -> (i32, i32) {
    %c0_i32 = arith.constant 0 : i32
    %c0_i32_0 = arith.constant 0 : i32
    %c0_i32_1 = arith.constant 0 : i32
    return %c0_i32, %c0_i32_0 : i32, i32
  }
  func.func @transform_7(%arg0: i32) -> (i32, i32) {
    %c0_i32 = arith.constant 0 : i32
    %c0_i32_0 = arith.constant 0 : i32
    %c0_i32_1 = arith.constant 0 : i32
    return %c0_i32, %c0_i32_0 : i32, i32
  }
  func.func @transform_8(%arg0: i32) -> (i32, i32) {
    %c0_i32 = arith.constant 0 : i32
    %c0_i32_0 = arith.constant 0 : i32
    %c0_i32_1 = arith.constant 0 : i32
    return %c0_i32, %c0_i32_0 : i32, i32
  }
  func.func @transform_9(%arg0: i32) -> (i32, i32) {
    %c0_i32 = arith.constant 0 : i32
    %c0_i32_0 = arith.constant 0 : i32
    return %arg0, %c0_i32 : i32, i32
  }
}

</mosaic_0001>

<bundles_post_ra>
// kernel: tpu_custom_call.1
= control target key start
LH: loop header
LB: loop body
LE: loop exit
PB: predicated region body
PF: predicated region fallthrough
CT: control target
= control target key end

     0   :  { %14 = vsyncpa [#allocation3], 0  ;;  %s1169_s0 = inlined_call_operand.hbm [shape: bf16[16,128], index: 0, kind: input, shape index: {}]   ;;  %s1170_s1 = inlined_call_operand.hbm [shape: bf16[128,128], index: 1, kind: input, shape index: {}]   ;;  %s1171_s2 = inlined_call_operand.vmem [shape: f32[1,128], index: 2, kind: input, shape index: {}]   ;;  %s1172_s3 = inlined_call_operand.hbm [shape: bf16[128,128], index: 3, kind: input, shape index: {}]   ;;  %s1173_s4 = inlined_call_operand.vmem [shape: f32[1,128], index: 4, kind: input, shape index: {}]   ;;  %s1174_s5 = inlined_call_operand.hbm [shape: bf16[128,128], index: 5, kind: input, shape index: {}]   ;;  %s1175_s6 = inlined_call_operand.vmem [shape: f32[1,128], index: 6, kind: input, shape index: {}]   ;;  %s1176_s7 = inlined_call_operand.hbm [shape: bf16[128,128], index: 7, kind: input, shape index: {}]   ;;  %s1177_s8 = inlined_call_operand.vmem [shape: f32[1,128], index: 8, kind: input, shape index: {}]   ;;  %s1178_s9 = inlined_call_operand.hbm [shape: f32[16,128], index: 9, kind: output, shape index: {}]  }
   0x1   :  { %15 = vsyncpa [#allocation6], 0 }
   0x2   :  { %16 = vsyncpa [#allocation9], 0 }
   0x3   :  { %17 = vsyncpa [#allocation4], 0  ;;  %s954_s30 = smov [#allocation5]   ;;  %s955_s11 = smov [#allocation8]  }
   0x4   :  { %s35_s10 = sshll.u32 %s954_s30, 4  ;;  %s63_s12 = sshll.u32 %s955_s11, 4  ;;  %s36_s10 = int_to_ptr.vmem [resolvable:$true] %s35_s10  ;;  %s1016_s12 = int_to_ptr.vmem [resolvable:$true] %s63_s12 }
   0x5   :  { %s814_s15 = scalar_lea.hbm %s1170_s1, 1024 }
   0x6   :  { %p815_p0 = scmp.ne.s32.totalorder %s1170_s1, %s814_s15  ;;  %p818_p1 = scmp.lt.u32.totalorder %s814_s15, %s1170_s1 }
   0x8   :  { %p820_p2 = pnand %p818_p1, %p815_p0 }
   0xa   :  { %823 = shalt.err (!%p820_p2)
}
   0xb   :  { %s824_s20 = scalar_lea.vmem %s36_s10, 1024  ;;  %p829_p4 = scmp.lt.s32.totalorder %s36_s10, %s36_s10 }
   0xc   :  { %p825_p3 = scmp.ne.s32.totalorder %s36_s10, %s824_s20  ;;  %p830_p5 = scmp.lt.s32.totalorder %s824_s20, %s824_s20 }
   0xe   :  { %p831_p6 = por %p830_p5, %p829_p4 }
  0x10   :  { %p832_p7 = pnand %p831_p6, %p825_p3 }
  0x12   :  { %835 = shalt.err (!%p832_p7)
}
  0x13   :  { %s956_s21 = smov 64   ;;  %s957_s22 = smov 4  }
  0x14   :  { %41 = dma.hbm_to_vmem [thread:$0]  %s1170_s1, 1024, %s36_s10, [#allocation6], %s956_s21, %s956_s21, %s957_s22  }
  0x15   :  { %s836_s27 = scalar_lea.hbm %s1174_s5, 1024 }
  0x16   :  { %p837_p8 = scmp.ne.s32.totalorder %s1174_s5, %s836_s27  ;;  %p840_p9 = scmp.lt.u32.totalorder %s836_s27, %s1174_s5 }
  0x18   :  { %p842_p10 = pnand %p840_p9, %p837_p8 }
  0x1a   :  { %845 = shalt.err (!%p842_p10)
}
  0x1b   :  { %s846_s13 = scalar_lea.vmem %s1016_s12, 1024  ;;  %p851_p12 = scmp.lt.s32.totalorder %s1016_s12, %s1016_s12 }
  0x1c   :  { %p847_p11 = scmp.ne.s32.totalorder %s1016_s12, %s846_s13  ;;  %p852_p13 = scmp.lt.s32.totalorder %s846_s13, %s846_s13 }
  0x1e   :  { %p853_p0 = por %p852_p13, %p851_p12 }
  0x20   :  { %p854_p1 = pnand %p853_p0, %p847_p11 }
  0x22   :  { %857 = shalt.err (!%p854_p1)
}
  0x23   :  { %69 = dma.hbm_to_vmem [thread:$0]  %s1174_s5, 1024, %s1016_s12, [#allocation9], %s956_s21, %s956_s21, %s957_s22  }
  0x24   :  { %s958_s14 = smov [#allocation2]   ;;  %s959_s16 = smov [#allocation7]  }
  0x25   :  { %s23_s15 = sshll.u32 %s958_s14, 4  ;;  %s49_s17 = sshll.u32 %s959_s16, 4  ;;  %s24_s15 = int_to_ptr.vmem [resolvable:$true] %s23_s15  ;;  %s1053_s17 = int_to_ptr.vmem [resolvable:$true] %s49_s17 }
  0x26   :  { %s858_s20 = scalar_lea.hbm %s1169_s0, 128 }
  0x27   :  { %p859_p2 = scmp.ne.s32.totalorder %s1169_s0, %s858_s20  ;;  %p862_p3 = scmp.lt.u32.totalorder %s858_s20, %s1169_s0 }
  0x29   :  { %p864_p4 = pnand %p862_p3, %p859_p2 }
  0x2b   :  { %867 = shalt.err (!%p864_p4)
}
  0x2c   :  { %s868_s5 = scalar_lea.vmem %s24_s15, 128  ;;  %p873_p6 = scmp.lt.s32.totalorder %s24_s15, %s24_s15 }
  0x2d   :  { %p869_p5 = scmp.ne.s32.totalorder %s24_s15, %s868_s5  ;;  %p874_p7 = scmp.lt.s32.totalorder %s868_s5, %s868_s5 }
  0x2f   :  { %p875_p8 = por %p874_p7, %p873_p6 }
  0x31   :  { %p876_p9 = pnand %p875_p8, %p869_p5 }
  0x33   :  { %879 = shalt.err (!%p876_p9)
}
  0x34   :  { %29 = dma.hbm_to_vmem [thread:$0]  %s1169_s0, 128, %s24_s15, [#allocation3], %s956_s21, %s956_s21, %s957_s22  }
  0x35   :  { %s880_s30 = scalar_lea.hbm %s1172_s3, 1024 }
  0x36   :  { %p881_p10 = scmp.ne.s32.totalorder %s1172_s3, %s880_s30  ;;  %p884_p11 = scmp.lt.u32.totalorder %s880_s30, %s1172_s3 }
  0x38   :  { %p886_p12 = pnand %p884_p11, %p881_p10 }
  0x3a   :  { %889 = shalt.err (!%p886_p12)
}
  0x3b   :  { %s890_s14 = scalar_lea.vmem %s1053_s17, 1024  ;;  %p895_p0 = scmp.lt.s32.totalorder %s1053_s17, %s1053_s17 }
  0x3c   :  { %p891_p13 = scmp.ne.s32.totalorder %s1053_s17, %s890_s14  ;;  %p896_p1 = scmp.lt.s32.totalorder %s890_s14, %s890_s14 }
  0x3e   :  { %p897_p2 = por %p896_p1, %p895_p0 }
  0x40   :  { %p898_p3 = pnand %p897_p2, %p891_p13 }
  0x42   :  { %901 = shalt.err (!%p898_p3)
}
  0x43   :  { %55 = dma.hbm_to_vmem [thread:$0]  %s1172_s3, 1024, %s1053_s17, [#allocation6], %s956_s21, %s956_s21, %s957_s22  }
  0x44   :  { %s960_s16 = smov [#allocation10]   ;;  %s902_s23 = scalar_lea.hbm %s1176_s7, 1024 }
  0x45   :  { %s77_s18 = sshll.u32 %s960_s16, 4  ;;  %p903_p4 = scmp.ne.s32.totalorder %s1176_s7, %s902_s23  ;;  %s78_s18 = int_to_ptr.vmem [resolvable:$true] %s77_s18 }
  0x46   :  { %p906_p5 = scmp.lt.u32.totalorder %s902_s23, %s1176_s7 }
  0x48   :  { %p908_p6 = pnand %p906_p5, %p903_p4 }
  0x4a   :  { %911 = shalt.err (!%p908_p6)
}
  0x4b   :  { %s912_s12 = scalar_lea.vmem %s78_s18, 1024  ;;  %p917_p8 = scmp.lt.s32.totalorder %s78_s18, %s78_s18 }
  0x4c   :  { %p913_p7 = scmp.ne.s32.totalorder %s78_s18, %s912_s12  ;;  %p918_p9 = scmp.lt.s32.totalorder %s912_s12, %s912_s12 }
  0x4e   :  { %p919_p10 = por %p918_p9, %p917_p8 }
  0x50   :  { %p920_p11 = pnand %p919_p10, %p913_p7 }
  0x52   :  { %923 = shalt.err (!%p920_p11)
}
  0x53   :  { %83 = dma.hbm_to_vmem [thread:$0]  %s1176_s7, 1024, %s78_s18, [#allocation9], %s956_s21, %s956_s21, %s957_s22  }
  0x54   :  { %946 = dma.done.wait [#allocation3], 128  }
  0x55   :  { %947 = vsyncadd [#allocation3], 4294967168 }
  0x56   :  { %948 = dma.done.wait [#allocation6], 2048  }
  0x57   :  { %949 = vsyncadd [#allocation6], 4294965248 }
  0x58   :  { %950 = dma.done.wait [#allocation9], 2048  }
  0x59   :  { %951 = vsyncadd [#allocation9], 4294965248  ;;  %v961_v0 = vmov 0.0   ;;  %vm962_vm0 = vmmov 0   ;;  %v773_v1 = vld [vmem:[#allocation5] sm:$0xff]   ;;  %v774_v2 = vld [vmem:[#allocation5 + $0x8] sm:$0xff]  }
  0x5a   :  { %681 = vmatprep.subr.bf16.mxu0 %v961_v0  ;;  %697 = vmatprep.mubr.msk.bf16.mxu0 %vm962_vm0, %v961_v0  ;;  %v775_v3 = vld [vmem:[#allocation5 + $0x10] sm:$0xff]   ;;  %v782_v4 = vld [vmem:[#allocation7] sm:$0xff]   ;;  %v776_v5 = vld [vmem:[#allocation5 + $0x18] sm:$0xff]  }
  0x5b   :  { %701 = vmatprep.subr.bf16.mxu1 %v961_v0  ;;  %717 = vmatprep.mubr.msk.bf16.mxu1 %vm962_vm0, %v961_v0  ;;  %v783_v6 = vld [vmem:[#allocation7 + $0x8] sm:$0xff]   ;;  %v777_v7 = vld [vmem:[#allocation5 + $0x20] sm:$0xff]   ;;  %v784_v8 = vld [vmem:[#allocation7 + $0x10] sm:$0xff]  }
  0x5c   :  { %682 = vmatpush3.bf16.msra.mxu0 %v773_v1  ;;  %702 = vmatpush3.bf16.msra.mxu1 %v782_v4  ;;  %v778_v9 = vld [vmem:[#allocation5 + $0x28] sm:$0xff]   ;;  %v785_v10 = vld [vmem:[#allocation7 + $0x18] sm:$0xff]   ;;  %v779_v11 = vld [vmem:[#allocation5 + $0x30] sm:$0xff]  }
  0x5d   :  { %683 = vmatprep.subr.bf16.mxu0 %v961_v0  ;;  %703 = vmatprep.subr.bf16.mxu1 %v961_v0  ;;  %v786_v12 = vld [vmem:[#allocation7 + $0x20] sm:$0xff]   ;;  %v780_v13 = vld [vmem:[#allocation5 + $0x38] sm:$0xff]   ;;  %v787_v14 = vld [vmem:[#allocation7 + $0x28] sm:$0xff]  }
  0x5e   :  { %v781_v15 = vld [vmem:[#allocation2] sm:$0xff]   ;;  %v788_v16 = vld [vmem:[#allocation7 + $0x30] sm:$0xff]   ;;  %v790_v18 = vld [vmem:[#allocation8] sm:$0xff]  }
  0x5f   :  { %v789_v17 = vld [vmem:[#allocation7 + $0x38] sm:$0xff]   ;;  %v791_v19 = vld [vmem:[#allocation8 + $0x8] sm:$0xff]   ;;  %v792_v20 = vld [vmem:[#allocation8 + $0x10] sm:$0xff]  }
  0x60   :  { %684 = vmatpush3.bf16.msra.mxu0 %v774_v2  ;;  %704 = vmatpush3.bf16.msra.mxu1 %v783_v6  ;;  %v793_v21 = vld [vmem:[#allocation8 + $0x18] sm:$0xff]   ;;  %v794_v22 = vld [vmem:[#allocation8 + $0x20] sm:$0xff]   ;;  %v795_v23 = vld [vmem:[#allocation8 + $0x28] sm:$0xff]  }
  0x61   :  { %685 = vmatprep.subr.bf16.mxu0 %v961_v0  ;;  %705 = vmatprep.subr.bf16.mxu1 %v961_v0  ;;  %v608_v24 = vld [vmem:[%s1171_s2] ss:$0 sm:$0xff]  ;;  %v796_v34 = vld [vmem:[#allocation8 + $0x30] sm:$0xff]   ;;  %v798_v36 = vld [vmem:[#allocation10] sm:$0xff]  }
  0x62   :  { %v797_v35 = vld [vmem:[#allocation8 + $0x38] sm:$0xff]   ;;  %v799_v37 = vld [vmem:[#allocation10 + $0x8] sm:$0xff]   ;;  %v800_v38 = vld [vmem:[#allocation10 + $0x10] sm:$0xff]  }
  0x63   :  { %v801_v39 = vld [vmem:[#allocation10 + $0x18] sm:$0xff]   ;;  %v802_v40 = vld [vmem:[#allocation10 + $0x20] sm:$0xff]   ;;  %v803_v41 = vld [vmem:[#allocation10 + $0x28] sm:$0xff]  }
  0x64   :  { %686 = vmatpush3.bf16.msra.mxu0 %v775_v3  ;;  %706 = vmatpush3.bf16.msra.mxu1 %v784_v8  ;;  %v618_v42 = vld [vmem:[%s1173_s4] ss:$0 sm:$0xff]  ;;  %v804_v52 = vld [vmem:[#allocation10 + $0x30] sm:$0xff]  }
  0x65   :  { %687 = vmatprep.subr.bf16.mxu0 %v961_v0  ;;  %707 = vmatprep.subr.bf16.mxu1 %v961_v0  ;;  %v805_v53 = vld [vmem:[#allocation10 + $0x38] sm:$0xff]  }
  0x66   :  { %v627_v54 = vld [vmem:[%s1175_s6] ss:$0 sm:$0xff]  ;;  %s963_s6 = smov [#allocation11]  }
  0x68   :  { %688 = vmatpush3.bf16.msra.mxu0 %v776_v5  ;;  %708 = vmatpush3.bf16.msra.mxu1 %v785_v10 }
  0x69   :  { %689 = vmatprep.subr.bf16.mxu0 %v961_v0  ;;  %709 = vmatprep.subr.bf16.mxu1 %v961_v0 }
  0x6c   :  { %690 = vmatpush3.bf16.msra.mxu0 %v777_v7  ;;  %710 = vmatpush3.bf16.msra.mxu1 %v786_v12 }
  0x6d   :  { %691 = vmatprep.subr.bf16.mxu0 %v961_v0  ;;  %711 = vmatprep.subr.bf16.mxu1 %v961_v0 }
  0x70   :  { %692 = vmatpush3.bf16.msra.mxu0 %v778_v9  ;;  %712 = vmatpush3.bf16.msra.mxu1 %v787_v14 }
  0x71   :  { %693 = vmatprep.subr.bf16.mxu0 %v961_v0  ;;  %713 = vmatprep.subr.bf16.mxu1 %v961_v0 }
  0x74   :  { %694 = vmatpush3.bf16.msra.mxu0 %v779_v11  ;;  %714 = vmatpush3.bf16.msra.mxu1 %v788_v16 }
  0x75   :  { %695 = vmatprep.subr.bf16.mxu0 %v961_v0  ;;  %715 = vmatprep.subr.bf16.mxu1 %v961_v0 }
  0x78   :  { %696 = vmatpush3.bf16.msra.mxu0 %v780_v13  ;;  %716 = vmatpush3.bf16.msra.mxu1 %v789_v17 }
  0x79   :  { %721 = vmatprep.subr.bf16.mxu0 %v961_v0  ;;  %741 = vmatprep.subr.bf16.mxu1 %v961_v0 }
  0x7b   :  { %698 = vmatmul.mubr.bf16.vlgmr.msra.gmra.mrb[0].mxu0 %v781_v15 }
  0x7c   :  { %737 = vmatprep.mubr.msk.bf16.mxu0 %vm962_vm0, %v961_v0  ;;  %722 = vmatpush3.bf16.msra.mxu0 %v790_v18 }
  0x7d   :  { %723 = vmatprep.subr.bf16.mxu0 %v961_v0 }
  0x80   :  { %724 = vmatpush3.bf16.msra.mxu0 %v791_v19 }
  0x81   :  { %725 = vmatprep.subr.bf16.mxu0 %v961_v0 }
  0x84   :  { %726 = vmatpush3.bf16.msra.mxu0 %v792_v20 }
  0x85   :  { %727 = vmatprep.subr.bf16.mxu0 %v961_v0 }
  0x88   :  { %728 = vmatpush3.bf16.msra.mxu0 %v793_v21 }
  0x89   :  { %729 = vmatprep.subr.bf16.mxu0 %v961_v0 }
  0x8c   :  { %730 = vmatpush3.bf16.msra.mxu0 %v794_v22 }
  0x8d   :  { %731 = vmatprep.subr.bf16.mxu0 %v961_v0 }
  0x90   :  { %732 = vmatpush3.bf16.msra.mxu0 %v795_v23 }
  0x91   :  { %733 = vmatprep.subr.bf16.mxu0 %v961_v0 }
  0x94   :  { %734 = vmatpush3.bf16.msra.mxu0 %v796_v34 }
  0x95   :  { %735 = vmatprep.subr.bf16.mxu0 %v961_v0 }
  0x98   :  { %736 = vmatpush3.bf16.msra.mxu0 %v797_v35 }
 0x14e   :  { %v215_v25 = vpop.f32.mrb[0].mxu0 }
 0x14f   :  { %v216_v26 = vadd.f32 %v608_v24, %v215_v25  ;;  %v699_v27 = vpop.f32.mrb[1].mxu0 }
 0x150   :  { %v218_v28 = vpop.f32.mrb[2].mxu0 }
 0x151   :  { %v219_v29 = vadd.f32 %v608_v24, %v218_v28  ;;  %v700_v30 = vpop.f32.mrb[3].mxu0  ;;  %v222_v31 = vmax.f32 %v216_v26, 0.0 }
 0x153   :  { %v223_v32 = vmax.f32 %v219_v29, 0.0 }
 0x155   :  { %v224_v33 = vpack.c.bf16 %v223_v32, %v222_v31 }
 0x157   :  { %718 = vmatmul.mubr.bf16.vlgmr.msra.gmra.mrb[0].mxu1 %v224_v33 }
 0x158   :  { %757 = vmatprep.mubr.msk.bf16.mxu1 %vm962_vm0, %v961_v0  ;;  %742 = vmatpush3.bf16.msra.mxu1 %v798_v36 }
 0x159   :  { %743 = vmatprep.subr.bf16.mxu1 %v961_v0 }
 0x15c   :  { %744 = vmatpush3.bf16.msra.mxu1 %v799_v37 }
 0x15d   :  { %745 = vmatprep.subr.bf16.mxu1 %v961_v0 }
 0x160   :  { %746 = vmatpush3.bf16.msra.mxu1 %v800_v38 }
 0x161   :  { %747 = vmatprep.subr.bf16.mxu1 %v961_v0 }
 0x164   :  { %748 = vmatpush3.bf16.msra.mxu1 %v801_v39 }
 0x165   :  { %749 = vmatprep.subr.bf16.mxu1 %v961_v0 }
 0x168   :  { %750 = vmatpush3.bf16.msra.mxu1 %v802_v40 }
 0x169   :  { %751 = vmatprep.subr.bf16.mxu1 %v961_v0 }
 0x16c   :  { %752 = vmatpush3.bf16.msra.mxu1 %v803_v41 }
 0x16d   :  { %753 = vmatprep.subr.bf16.mxu1 %v961_v0 }
 0x170   :  { %754 = vmatpush3.bf16.msra.mxu1 %v804_v52 }
 0x171   :  { %755 = vmatprep.subr.bf16.mxu1 %v961_v0  ;;  %v636_v0 = vld [vmem:[%s1177_s8] ss:$0 sm:$0xff]  ;;  %s594_s8 = sshll.u32 %s963_s6, 4  ;;  %s595_s8 = int_to_ptr.vmem [resolvable:$true] %s594_s8 }
 0x172   :  { %s924_s30 = scalar_lea.vmem %s595_s8, 256  ;;  %p929_p13 = scmp.lt.s32.totalorder %s595_s8, %s595_s8 }
 0x173   :  { %p925_p12 = scmp.ne.s32.totalorder %s595_s8, %s924_s30  ;;  %p930_p0 = scmp.lt.s32.totalorder %s924_s30, %s924_s30 }
 0x174   :  { %756 = vmatpush3.bf16.msra.mxu1 %v805_v53 }
 0x175   :  { %p931_p1 = por %p930_p0, %p929_p13 }
 0x177   :  { %p932_p2 = pnand %p931_p1, %p925_p12 }
 0x22a   :  { %v330_v43 = vpop.f32.mrb[0].mxu1 }
 0x22b   :  { %v331_v44 = vadd.f32 %v618_v42, %v330_v43  ;;  %v719_v45 = vpop.f32.mrb[1].mxu1 }
 0x22c   :  { %v333_v46 = vpop.f32.mrb[2].mxu1 }
 0x22d   :  { %v334_v47 = vadd.f32 %v618_v42, %v333_v46  ;;  %v720_v48 = vpop.f32.mrb[3].mxu1  ;;  %v337_v49 = vmax.f32 %v331_v44, 0.0 }
 0x22f   :  { %v338_v50 = vmax.f32 %v334_v47, 0.0 }
 0x231   :  { %v339_v51 = vpack.c.bf16 %v338_v50, %v337_v49 }
 0x233   :  { %738 = vmatmul.mubr.bf16.vlgmr.msra.gmra.mrb[4].mxu0 %v339_v51 }
 0x306   :  { %v445_v55 = vpop.f32.mrb[4].mxu0 }
 0x307   :  { %v446_v56 = vadd.f32 %v627_v54, %v445_v55  ;;  %v739_v57 = vpop.f32.mrb[5].mxu0 }
 0x308   :  { %v448_v58 = vpop.f32.mrb[6].mxu0 }
 0x309   :  { %v449_v59 = vadd.f32 %v627_v54, %v448_v58  ;;  %v740_v60 = vpop.f32.mrb[7].mxu0  ;;  %v452_v61 = vmax.f32 %v446_v56, 0.0 }
 0x30b   :  { %v453_v62 = vmax.f32 %v449_v59, 0.0 }
 0x30d   :  { %v454_v63 = vpack.c.bf16 %v453_v62, %v452_v61 }
 0x30f   :  { %758 = vmatmul.mubr.bf16.vlgmr.msra.gmra.mrb[4].mxu1 %v454_v63 }
 0x3e2   :  { %v560_v1 = vpop.f32.mrb[4].mxu1 }
 0x3e3   :  { %v561_v2 = vadd.f32 %v636_v0, %v560_v1  ;;  %v759_v3 = vpop.f32.mrb[5].mxu1 }
 0x3e4   :  { %v563_v4 = vpop.f32.mrb[6].mxu1 }
 0x3e5   :  { %567 = vmax.xlane.f32.xlu0 %v561_v2  ;;  %v760_v5 = vpop.f32.mrb[7].mxu1  ;;  %v564_v6 = vadd.f32 %v636_v0, %v563_v4 }
 0x3e9   :  { %569 = vmax.xlane.f32.xlu0 %v564_v6 }
 0x472   :  { %v568_v7 = vpop.xlane.xlu0 %567 }
 0x473   :  { %v571_v8 = vsub.f32 %v561_v2, %v568_v7 }
 0x475   :  { %v573_v9 = vmul.f32 1.442695, %v571_v8 }
 0x476   :  { %v570_v10 = vpop.xlane.xlu0 %569 }
 0x477   :  { %v572_v11 = vsub.f32 %v564_v6, %v570_v10  ;;  %806 = vpow2.f32 %v573_v9 }
 0x479   :  { %v575_v12 = vmul.f32 1.442695, %v572_v11 }
 0x47b   :  { %808 = vpow2.f32 %v575_v12 }
 0x481   :  { %v807_v13 = vpop.eup %806 }
 0x482   :  { %577 = vadd.xlane.f32.xlu1 %v807_v13 }
 0x485   :  { %v809_v14 = vpop.eup %808 }
 0x486   :  { %579 = vadd.xlane.f32.xlu1 %v809_v14 }
 0x50f   :  { %v578_v15 = vpop.xlane.xlu1 %577 }
 0x510   :  { %810 = vlog2.f32 %v578_v15 }
 0x513   :  { %v580_v16 = vpop.xlane.xlu1 %579 }
 0x514   :  { %812 = vlog2.f32 %v580_v16 }
 0x51a   :  { %v811_v17 = vpop.eup %810 }
 0x51b   :  { %v582_v18 = vmul.f32 0.6931472, %v811_v17 }
 0x51d   :  { %v585_v19 = vsub.f32 %v571_v8, %v582_v18 }
 0x51e   :  { %v813_v20 = vpop.eup %812 }
 0x51f   :  { %587 = vst [vmem:[#allocation11] sm:$0xff] %v585_v19  ;;  %v584_v21 = vmul.f32 0.6931472, %v813_v20 }
 0x521   :  { %v586_v22 = vsub.f32 %v572_v11, %v584_v21 }
 0x523   :  { %588 = vst [vmem:[#allocation11 + $0x8] sm:$0xff] %v586_v22 }
 0x524   :  { %935 = shalt.err (!%p932_p2)
}
 0x525   :  { %s936_s1 = scalar_lea.hbm %s1178_s9, 256 }
 0x526   :  { %p937_p3 = scmp.ne.s32.totalorder %s1178_s9, %s936_s1  ;;  %p940_p4 = scmp.lt.u32.totalorder %s936_s1, %s1178_s9 }
 0x528   :  { %p942_p5 = pnand %p940_p4, %p937_p3 }
 0x52a   :  { %945 = shalt.err (!%p942_p5)
}
 0x52b   :  { %s964_s16 = smov 128   ;;  %s965_s18 = smov 8  }
 0x52c   :  { %600 = dma.vmem_to_hbm [thread:$0]  %s595_s8, 256, %s1178_s9, [#allocation4], %s964_s16, %s964_s16, %s965_s18  }
 0x52d   :  { %952 = dma.done.wait [#allocation4], 256  }
 0x52e   :  { %953 = vsyncadd [#allocation4], 4294967040 }
 0x52f   :  { %604 = vsyncpa [#allocation3], 1 }
 0x530   :  { %605 = vsyncpa [#allocation6], 1 }
 0x531   :  { %606 = vsyncpa [#allocation9], 1 }
 0x532   :  { %607 = vsyncpa [#allocation4], 1 }

</bundles_post_ra>
